<compile_context>
chip_gen: v7x
topology: tpu7x:2x2x1
jax: 0.10.0
libtpu: 0.0.40
codegen_flags: <defaults>
</compile_context>

<pallas_src>
import functools

import jax
import jax.numpy as jnp
from jax.experimental import pallas as pl
from jax.experimental.pallas import tpu as pltpu


def _round_up(x, m):
    return ((x + m - 1) // m) * m


def _td3_actor_kernel(s_ref, w1_ref, b1_ref, w2_ref, b2_ref, w3_ref, b3_ref,
                      out_ref, *, max_action, action_dim):
    # MXU matmuls in the weight dtype (bf16 by default) with f32 accumulation;
    # all VPU/EUP math (bias add, relu, tanh, scaling) stays in f32.
    x = s_ref[...].astype(w1_ref.dtype)
    h1 = jnp.dot(x, w1_ref[...], preferred_element_type=jnp.float32) + b1_ref[...]
    h1 = jnp.maximum(h1, 0.0)
    h2 = jnp.dot(h1.astype(w2_ref.dtype), w2_ref[...],
                 preferred_element_type=jnp.float32) + b2_ref[...]
    h2 = jnp.maximum(h2, 0.0)
    a = jnp.dot(h2.astype(w3_ref.dtype), w3_ref[...],
                preferred_element_type=jnp.float32) + b3_ref[...]
    # Only the first `action_dim` lanes are real (the rest are MXU padding of
    # the head weights); slice before tanh + store so only useful data is
    # written back to HBM.
    out_ref[...] = max_action * jnp.tanh(a[:, :action_dim])


@functools.partial(jax.jit,
                   static_argnames=("max_action", "batch_tile", "matmul_dtype"))
def td3_actor_forward(state, params, *, max_action=1.0, batch_tile=None,
                      matmul_dtype=jnp.bfloat16):
    """state: (B, state_dim) f32; params: dict with w1,b1,w2,b2,w3,b3."""
    w1, b1 = params["w1"], params["b1"]
    w2, b2 = params["w2"], params["b2"]
    w3, b3 = params["w3"], params["b3"]

    B, state_dim = state.shape
    hidden = w1.shape[1]
    action_dim = w3.shape[1]

    # --- batch tiling (generation-aware) -------------------------------------
    if batch_tile is None:
        if B <= 256:
            # Small RL-actor batches: don't pad up to 256; 16 keeps bf16
            # sublane packing and the (8,128) block rule clean.
            batch_tile = max(16, _round_up(B, 16))
        else:
            # >= 2 grid steps once B >= 512 so v7x megacore shards the batch
            # axis; tiles of 256-1024 rows amortize the ~0.35us/step pipeline
            # overhead on v5e/v6e.  Per-step VMEM at tile 1024 is ~2-3 MiB,
            # far inside every generation's limit.
            batch_tile = min(1024, max(256, _round_up(pl.cdiv(B, 2), 256)))
    else:
        batch_tile = max(16, _round_up(int(batch_tile), 16))

    grid_b = pl.cdiv(B, batch_tile)
    padded_b = grid_b * batch_tile
    if padded_b != B:
        # Only materialize a padded copy for ragged batches.
        state = jnp.pad(state, ((0, padded_b - B), (0, 0)))

    # --- lane-dense head matmul, narrow store ---------------------------------
    # Pad the last Linear's weights to a 128-lane-wide MXU tile (zero weight /
    # zero bias in the padding), but store only the first action_dim columns.
    out_pad = _round_up(action_dim, 128)
    w3p = jnp.pad(w3, ((0, 0), (0, out_pad - action_dim)))
    b3p = jnp.pad(b3, ((0, out_pad - action_dim),))

    # Weights in bf16 (halves weight DMA bytes, 2x MXU rate on v6e/v7x);
    # biases stay f32 as (1, out) 2-D VMEM tiles that broadcast over rows.
    w1c = w1.astype(matmul_dtype)
    w2c = w2.astype(matmul_dtype)
    w3c = w3p.astype(matmul_dtype)
    b1_2d = b1.reshape(1, hidden).astype(jnp.float32)
    b2_2d = b2.reshape(1, hidden).astype(jnp.float32)
    b3_2d = b3p.reshape(1, out_pad).astype(jnp.float32)

    rep = lambda i: (0, 0)  # weights/biases resident across the whole grid

    def resident_spec(shape):
        # Constant index_map => no refetch; Buffered(1) avoids allocating a
        # useless second VMEM buffer for each resident operand.
        return pl.BlockSpec(shape, rep, pipeline_mode=pl.Buffered(1))

    flops = 2 * padded_b * (state_dim * hidden + hidden * hidden + hidden * out_pad)
    bytes_accessed = (padded_b * state_dim * 4                     # state read
                      + padded_b * action_dim * 4                  # narrow output write
                      + (w1c.size + w2c.size + w3c.size) * w1c.dtype.itemsize
                      + (b1_2d.size + b2_2d.size + b3_2d.size) * 4)

    out = pl.pallas_call(
        functools.partial(_td3_actor_kernel, max_action=float(max_action),
                          action_dim=action_dim),
        out_shape=jax.ShapeDtypeStruct((padded_b, action_dim), jnp.float32),
        grid_spec=pltpu.PrefetchScalarGridSpec(
            num_scalar_prefetch=0,
            grid=(grid_b,),
            in_specs=[
                pl.BlockSpec((batch_tile, state_dim), lambda i: (i, 0)),  # state
                resident_spec((state_dim, hidden)),                       # w1
                resident_spec((1, hidden)),                               # b1
                resident_spec((hidden, hidden)),                          # w2
                resident_spec((1, hidden)),                               # b2
                resident_spec((hidden, out_pad)),                         # w3 (padded)
                resident_spec((1, out_pad)),                              # b3 (padded)
            ],
            # Last dim == full array dim (action_dim), so the block is legal
            # even when action_dim < 128; the masked store costs only
            # store-slot cycles, which have large slack here.
            out_specs=pl.BlockSpec((batch_tile, action_dim), lambda i: (i, 0)),
        ),
        compiler_params=pltpu.CompilerParams(
            dimension_semantics=("parallel",),
            vmem_limit_bytes=32 * 1024 * 1024),
        cost_estimate=pl.CostEstimate(
            flops=flops,
            transcendentals=padded_b * action_dim,
            bytes_accessed=bytes_accessed),
    )(state, w1c, b1_2d, w2c, b2_2d, w3c, b3_2d)

    # Strip batch padding only when it was added (no extra copy otherwise).
    return out if padded_b == B else out[:B]


def init_td3_actor_params(key, state_dim, action_dim, hidden=256):
    """Deterministic init mimicking PyTorch's default Linear init
    (uniform(-1/sqrt(fan_in), 1/sqrt(fan_in)) for both weight and bias)."""
    def linear(k, fan_in, fan_out):
        kw, kb = jax.random.split(k)
        bound = 1.0 / jnp.sqrt(fan_in)
        w = jax.random.uniform(kw, (fan_in, fan_out), jnp.float32, -bound, bound)
        b = jax.random.uniform(kb, (fan_out,), jnp.float32, -bound, bound)
        return w, b

    k1, k2, k3 = jax.random.split(key, 3)
    w1, b1 = linear(k1, state_dim, hidden)
    w2, b2 = linear(k2, hidden, hidden)
    w3, b3 = linear(k3, hidden, action_dim)
    return dict(w1=w1, b1=b1, w2=w2, b2=b2, w3=w3, b3=b3)


def td3_actor_reference(state, p, max_action=1.0):
    """Pure-JAX f32 reference matching the PyTorch forward."""
    h = jnp.maximum(state @ p["w1"] + p["b1"], 0.0)
    h = jnp.maximum(h @ p["w2"] + p["b2"], 0.0)
    return max_action * jnp.tanh(h @ p["w3"] + p["b3"])


if __name__ == "__main__":
    key = jax.random.PRNGKey(0)
    k_state, k_params = jax.random.split(key)

    batch, state_dim, action_dim, max_action = 32, 16, 8, 2.0
    state = jax.random.normal(k_state, (batch, state_dim), jnp.float32)
    params = init_td3_actor_params(k_params, state_dim, action_dim)

    # Default (bf16 MXU operands, f32 accumulation) path.
    act = jax.block_until_ready(
        td3_actor_forward(state, params, max_action=max_action))
    ref = td3_actor_reference(state, params, max_action)
    assert act.shape == (batch, action_dim)
    assert jnp.allclose(act, ref, atol=3e-2, rtol=3e-2), \
        float(jnp.max(jnp.abs(act - ref)))
    assert bool(jnp.all(jnp.abs(act) <= max_action + 1e-4))

    # Full-f32 matmul path matches the reference tightly.
    act_f32 = jax.block_until_ready(
        td3_actor_forward(state, params, max_action=max_action,
                          matmul_dtype=jnp.float32))
    assert jnp.allclose(act_f32, ref, atol=1e-5, rtol=1e-5), \
        float(jnp.max(jnp.abs(act_f32 - ref)))

    # Ragged batch exercises the tail-padding path (padded rows discarded).
    b_ragged = 37
    state_r = jax.random.normal(k_state, (b_ragged, state_dim), jnp.float32)
    act_r = jax.block_until_ready(
        td3_actor_forward(state_r, params, max_action=max_action,
                          matmul_dtype=jnp.float32))
    ref_r = td3_actor_reference(state_r, params, max_action)
    assert act_r.shape == (b_ragged, action_dim)
    assert jnp.allclose(act_r, ref_r, atol=1e-5, rtol=1e-5), \
        float(jnp.max(jnp.abs(act_r - ref_r)))

    print("KERNEL_OK")
</pallas_src>

<mosaic_0001>
module attributes {stable_mosaic.version = 11 : i64} {
  func.func @_td3_actor_kernel(%arg0: i32, %arg1: memref<32x16xf32, #tpu.memory_space<vmem>>, %arg2: memref<16x256xbf16, #tpu.memory_space<vmem>>, %arg3: memref<1x256xf32, #tpu.memory_space<vmem>>, %arg4: memref<256x256xbf16, #tpu.memory_space<vmem>>, %arg5: memref<1x256xf32, #tpu.memory_space<vmem>>, %arg6: memref<256x128xbf16, #tpu.memory_space<vmem>>, %arg7: memref<1x128xf32, #tpu.memory_space<vmem>>, %arg8: memref<32x8xf32, #tpu.memory_space<vmem>>) attributes {dimension_semantics = [#tpu.dimension_semantics<parallel>], iteration_bounds = array<i64: 1>, scalar_prefetch = 0 : i64, scratch_operands = 0 : i64, tpu.core_type = #tpu.core_type<tc>, window_params = [{transform_indices = @transform_0, window_bounds = array<i64: 32, 16>}, {pipeline_mode = #tpu.pipeline_mode<synchronous>, transform_indices = @transform_1, window_bounds = array<i64: 16, 256>}, {pipeline_mode = #tpu.pipeline_mode<synchronous>, transform_indices = @transform_2, window_bounds = array<i64: 1, 256>}, {pipeline_mode = #tpu.pipeline_mode<synchronous>, transform_indices = @transform_3, window_bounds = array<i64: 256, 256>}, {pipeline_mode = #tpu.pipeline_mode<synchronous>, transform_indices = @transform_4, window_bounds = array<i64: 1, 256>}, {pipeline_mode = #tpu.pipeline_mode<synchronous>, transform_indices = @transform_5, window_bounds = array<i64: 256, 128>}, {pipeline_mode = #tpu.pipeline_mode<synchronous>, transform_indices = @transform_6, window_bounds = array<i64: 1, 128>}, {transform_indices = @transform_7, window_bounds = array<i64: 32, 8>}]} {
    %c0 = arith.constant 0 : index
    %c0_0 = arith.constant 0 : index
    %0 = vector.load %arg1[%c0, %c0_0] : memref<32x16xf32, #tpu.memory_space<vmem>>, vector<32x16xf32>
    %1 = arith.truncf %0 : vector<32x16xf32> to vector<32x16xbf16>
    %c0_1 = arith.constant 0 : index
    %c0_2 = arith.constant 0 : index
    %2 = vector.load %arg2[%c0_1, %c0_2] : memref<16x256xbf16, #tpu.memory_space<vmem>>, vector<16x256xbf16>
    %cst = arith.constant dense<0.000000e+00> : vector<32x256xf32>
    %3 = tpu.matmul %1, %2, %cst {dimension_numbers = #tpu.dot_dimension_numbers<[1], [0], [0], [1], [0, 0, 1, 1], [], []>} : vector<32x16xbf16>, vector<16x256xbf16>, vector<32x256xf32> -> vector<32x256xf32>
    %c0_3 = arith.constant 0 : index
    %c0_4 = arith.constant 0 : index
    %4 = vector.load %arg3[%c0_3, %c0_4] : memref<1x256xf32, #tpu.memory_space<vmem>>, vector<1x256xf32>
    %5 = vector.broadcast %4 : vector<1x256xf32> to vector<32x256xf32>
    %6 = arith.addf %3, %5 : vector<32x256xf32>
    %cst_5 = arith.constant 0.000000e+00 : f32
    %7 = vector.broadcast %cst_5 : f32 to vector<32x256xf32>
    %8 = arith.maximumf %6, %7 : vector<32x256xf32>
    %9 = arith.truncf %8 : vector<32x256xf32> to vector<32x256xbf16>
    %c0_6 = arith.constant 0 : index
    %c0_7 = arith.constant 0 : index
    %10 = vector.load %arg4[%c0_6, %c0_7] : memref<256x256xbf16, #tpu.memory_space<vmem>>, vector<256x256xbf16>
    %cst_8 = arith.constant dense<0.000000e+00> : vector<32x256xf32>
    %11 = tpu.matmul %9, %10, %cst_8 {dimension_numbers = #tpu.dot_dimension_numbers<[1], [0], [0], [1], [0, 0, 1, 1], [], []>} : vector<32x256xbf16>, vector<256x256xbf16>, vector<32x256xf32> -> vector<32x256xf32>
    %c0_9 = arith.constant 0 : index
    %c0_10 = arith.constant 0 : index
    %12 = vector.load %arg5[%c0_9, %c0_10] : memref<1x256xf32, #tpu.memory_space<vmem>>, vector<1x256xf32>
    %13 = vector.broadcast %12 : vector<1x256xf32> to vector<32x256xf32>
    %14 = arith.addf %11, %13 : vector<32x256xf32>
    %cst_11 = arith.constant 0.000000e+00 : f32
    %15 = vector.broadcast %cst_11 : f32 to vector<32x256xf32>
    %16 = arith.maximumf %14, %15 : vector<32x256xf32>
    %17 = arith.truncf %16 : vector<32x256xf32> to vector<32x256xbf16>
    %c0_12 = arith.constant 0 : index
    %c0_13 = arith.constant 0 : index
    %18 = vector.load %arg6[%c0_12, %c0_13] : memref<256x128xbf16, #tpu.memory_space<vmem>>, vector<256x128xbf16>
    %cst_14 = arith.constant dense<0.000000e+00> : vector<32x128xf32>
    %19 = tpu.matmul %17, %18, %cst_14 {dimension_numbers = #tpu.dot_dimension_numbers<[1], [0], [0], [1], [0, 0, 1, 1], [], []>} : vector<32x256xbf16>, vector<256x128xbf16>, vector<32x128xf32> -> vector<32x128xf32>
    %c0_15 = arith.constant 0 : index
    %c0_16 = arith.constant 0 : index
    %20 = vector.load %arg7[%c0_15, %c0_16] : memref<1x128xf32, #tpu.memory_space<vmem>>, vector<1x128xf32>
    %21 = vector.broadcast %20 : vector<1x128xf32> to vector<32x128xf32>
    %22 = arith.addf %19, %21 : vector<32x128xf32>
    %23 = vector.extract_strided_slice %22 {offsets = [0, 0], sizes = [32, 8], strides = [1, 1]} : vector<32x128xf32> to vector<32x8xf32>
    %24 = math.tanh %23 : vector<32x8xf32>
    %cst_17 = arith.constant 2.000000e+00 : f32
    %25 = vector.broadcast %cst_17 : f32 to vector<32x8xf32>
    %26 = arith.mulf %25, %24 : vector<32x8xf32>
    %c0_18 = arith.constant 0 : index
    %c0_19 = arith.constant 0 : index
    %27 = vector.load %arg8[%c0_18, %c0_19] : memref<32x8xf32, #tpu.memory_space<vmem>>, vector<32x8xf32>
    tpu.vector_store %arg8[%c0_18, %c0_19], %26 {strides = array<i32>} : memref<32x8xf32, #tpu.memory_space<vmem>>, vector<32x8xf32>,
    return
  }
  func.func @transform_0(%arg0: i32) -> (i32, i32) {
    %c0_i32 = arith.constant 0 : i32
    %c0_i32_0 = arith.constant 0 : i32
    return %arg0, %c0_i32 : i32, i32
  }
  func.func @transform_1(%arg0: i32) -> (i32, i32) {
    %c0_i32 = arith.constant 0 : i32
    %c0_i32_0 = arith.constant 0 : i32
    %c0_i32_1 = arith.constant 0 : i32
    return %c0_i32, %c0_i32_0 : i32, i32
  }
  func.func @transform_2(%arg0: i32) -> (i32, i32) {
    %c0_i32 = arith.constant 0 : i32
    %c0_i32_0 = arith.constant 0 : i32
    %c0_i32_1 = arith.constant 0 : i32
    return %c0_i32, %c0_i32_0 : i32, i32
  }
  func.func @transform_3(%arg0: i32) -> (i32, i32) {
    %c0_i32 = arith.constant 0 : i32
    %c0_i32_0 = arith.constant 0 : i32
    %c0_i32_1 = arith.constant 0 : i32
    return %c0_i32, %c0_i32_0 : i32, i32
  }
  func.func @transform_4(%arg0: i32) -> (i32, i32) {
    %c0_i32 = arith.constant 0 : i32
    %c0_i32_0 = arith.constant 0 : i32
    %c0_i32_1 = arith.constant 0 : i32
    return %c0_i32, %c0_i32_0 : i32, i32
  }
  func.func @transform_5(%arg0: i32) -> (i32, i32) {
    %c0_i32 = arith.constant 0 : i32
    %c0_i32_0 = arith.constant 0 : i32
    %c0_i32_1 = arith.constant 0 : i32
    return %c0_i32, %c0_i32_0 : i32, i32
  }
  func.func @transform_6(%arg0: i32) -> (i32, i32) {
    %c0_i32 = arith.constant 0 : i32
    %c0_i32_0 = arith.constant 0 : i32
    %c0_i32_1 = arith.constant 0 : i32
    return %c0_i32, %c0_i32_0 : i32, i32
  }
  func.func @transform_7(%arg0: i32) -> (i32, i32) {
    %c0_i32 = arith.constant 0 : i32
    %c0_i32_0 = arith.constant 0 : i32
    return %arg0, %c0_i32 : i32, i32
  }
}

</mosaic_0001>

<bundles_post_ra>
// kernel: td3_actor_forward.1
= control target key start
LH: loop header
LB: loop body
LE: loop exit
PB: predicated region body
PF: predicated region fallthrough
CT: control target
= control target key end

     0   :  { %v756_v1 = vmov 0   ;;  %vm57_vm0 = vcmask 130048   ;;  %v37_v52 = vlaneseq  ;;  %vm590_vm1 = vcmask 64512   ;;  %s982_s1 = inlined_call_operand.vmem [shape: bf16[16,256], index: 1, kind: input, shape index: {}]   ;;  %s983_s0 = inlined_call_operand.vmem [shape: f32[32,16], index: 0, kind: input, shape index: {}]   ;;  %s984_s3 = inlined_call_operand.vmem [shape: bf16[256,256], index: 3, kind: input, shape index: {}]   ;;  %s985_s5 = inlined_call_operand.vmem [shape: bf16[256,128], index: 5, kind: input, shape index: {}]   ;;  %s986_s2 = inlined_call_operand.vmem [shape: f32[1,256], index: 2, kind: input, shape index: {}]   ;;  %s987_s4 = inlined_call_operand.vmem [shape: f32[1,256], index: 4, kind: input, shape index: {}]   ;;  %s988_s6 = inlined_call_operand.vmem [shape: f32[1,128], index: 6, kind: input, shape index: {}]   ;;  %s989_s7 = inlined_call_operand.vmem [shape: f32[32,8], index: 7, kind: output, shape index: {}]  }
   0x1   :  { %v681_v0 = vld [vmem:[%s982_s1 + $0x4] ss:$8 sps:$4 sm:$0xff]   ;;  %96 = vmatprep.mubr.bf16.mxu0 %v756_v1  ;;  %v683_v2 = vld [vmem:[%s982_s1] ss:$8 sps:$4 sm:$0xff]   ;;  %v687_v8 = vld [vmem:[%s984_s3 + $0x14] ss:$8 sps:$4 sm:$0xff]  }
   0x2   :  { %v27_v3 = vld [vmem:[%s983_s0] sm:$0xff]  ;;  %v28_v4 = vld [vmem:[%s983_s0 + $0x8] sm:$0xff]  ;;  %64 = vmatprep.subr.bf16.mxu0 %v681_v0  ;;  %v29_v9 = vld [vmem:[%s983_s0 + $0x10] sm:$0xff]  ;;  %v38_v53 = vshrl.u32 %v37_v52, 7 }
   0x3   :  { %v31_v5 = vpack.c.bf16 %v28_v4, %v27_v3  ;;  %65 = vmatpush1.bf16.msra.mxu0 %v683_v2  ;;  %v684_v6 = vld [vmem:[%s984_s3 + $0x4] ss:$8 sps:$4 sm:$0xff]   ;;  %v686_v7 = vld [vmem:[%s984_s3] ss:$8 sps:$4 sm:$0xff]   ;;  %v689_v10 = vld [vmem:[%s984_s3 + $0x10] ss:$8 sps:$4 sm:$0xff]  }
   0x4   :  { %333 = vmatprep.subr.bf16.mxu1 %v684_v6  ;;  %v30_v11 = vld [vmem:[%s983_s0 + $0x18] sm:$0xff]  ;;  %v690_v12 = vld [vmem:[%s984_s3 + $0x24] ss:$8 sps:$4 sm:$0xff]   ;;  %v692_v14 = vld [vmem:[%s984_s3 + $0x20] ss:$8 sps:$4 sm:$0xff]   ;;  %v39_v54 = vsub.s32 0, %v38_v53 }
   0x5   :  { %334 = vmatpush1.bf16.msra.mxu1 %v686_v7  ;;  %v32_v13 = vpack.c.bf16 %v30_v11, %v29_v9  ;;  %v693_v15 = vld [vmem:[%s984_s3 + $0x34] ss:$8 sps:$4 sm:$0xff]   ;;  %v695_v16 = vld [vmem:[%s984_s3 + $0x30] ss:$8 sps:$4 sm:$0xff]   ;;  %v696_v17 = vld [vmem:[%s984_s3 + $0x44] ss:$8 sps:$4 sm:$0xff]  }
   0x6   :  { %601 = vmatmul.mubr.msk.bf16.vlgmr.msra.gmra.mrb[0].mxu0 %vm57_vm0, %v31_v5  ;;  %335 = vmatprep.subr.bf16.mxu1 %v687_v8  ;;  %v698_v18 = vld [vmem:[%s984_s3 + $0x40] ss:$8 sps:$4 sm:$0xff]   ;;  %v699_v19 = vld [vmem:[%s984_s3 + $0x54] ss:$8 sps:$4 sm:$0xff]   ;;  %v701_v20 = vld [vmem:[%s984_s3 + $0x50] ss:$8 sps:$4 sm:$0xff]  }
   0x7   :  { %106 = vmatprep.mubr.bf16.mxu0 %v756_v1  ;;  %v702_v21 = vld [vmem:[%s984_s3 + $0x64] ss:$8 sps:$4 sm:$0xff]   ;;  %v704_v22 = vld [vmem:[%s984_s3 + $0x60] ss:$8 sps:$4 sm:$0xff]   ;;  %v705_v23 = vld [vmem:[%s984_s3 + $0x74] ss:$8 sps:$4 sm:$0xff]  }
   0x8   :  { %v707_v24 = vld [vmem:[%s984_s3 + $0x70] ss:$8 sps:$4 sm:$0xff]   ;;  %v708_v25 = vld [vmem:[%s984_s3 + $0x84] ss:$8 sps:$4 sm:$0xff]   ;;  %v710_v26 = vld [vmem:[%s984_s3 + $0x80] ss:$8 sps:$4 sm:$0xff]  }
   0x9   :  { %336 = vmatpush1.bf16.msra.mxu1 %v689_v10  ;;  %v711_v27 = vld [vmem:[%s984_s3 + $0x94] ss:$8 sps:$4 sm:$0xff]   ;;  %v713_v28 = vld [vmem:[%s984_s3 + $0x90] ss:$8 sps:$4 sm:$0xff]   ;;  %v714_v29 = vld [vmem:[%s984_s3 + $0xa4] ss:$8 sps:$4 sm:$0xff]  }
   0xa   :  { %337 = vmatprep.subr.bf16.mxu1 %v690_v12  ;;  %v716_v30 = vld [vmem:[%s984_s3 + $0xa0] ss:$8 sps:$4 sm:$0xff]   ;;  %v717_v31 = vld [vmem:[%s984_s3 + $0xb4] ss:$8 sps:$4 sm:$0xff]   ;;  %v719_v32 = vld [vmem:[%s984_s3 + $0xb0] ss:$8 sps:$4 sm:$0xff]  }
   0xb   :  { %v720_v33 = vld [vmem:[%s984_s3 + $0xc4] ss:$8 sps:$4 sm:$0xff]   ;;  %v722_v34 = vld [vmem:[%s984_s3 + $0xc0] ss:$8 sps:$4 sm:$0xff]   ;;  %v723_v35 = vld [vmem:[%s984_s3 + $0xd4] ss:$8 sps:$4 sm:$0xff]  }
   0xc   :  { %v725_v36 = vld [vmem:[%s984_s3 + $0xd0] ss:$8 sps:$4 sm:$0xff]   ;;  %v726_v37 = vld [vmem:[%s984_s3 + $0xe4] ss:$8 sps:$4 sm:$0xff]   ;;  %v728_v38 = vld [vmem:[%s984_s3 + $0xe0] ss:$8 sps:$4 sm:$0xff]  }
   0xd   :  { %338 = vmatpush1.bf16.msra.mxu1 %v692_v14  ;;  %v729_v39 = vld [vmem:[%s984_s3 + $0xf4] ss:$8 sps:$4 sm:$0xff]   ;;  %v731_v40 = vld [vmem:[%s984_s3 + $0xf0] ss:$8 sps:$4 sm:$0xff]   ;;  %v732_v41 = vld [vmem:[%s985_s5 + $0x40] sm:$0xff]   ;;  %v43_v56 = vsub.s32 1, %v38_v53 }
   0xe   :  { %602 = vmatmul.mubr.msk.bf16.gmra.mrb[4].mxu0 %vm57_vm0, %v32_v13  ;;  %339 = vmatprep.subr.bf16.mxu1 %v693_v15  ;;  %v733_v42 = vld [vmem:[%s985_s5] sm:$0xff]   ;;  %v734_v43 = vld [vmem:[%s985_s5 + $0x48] sm:$0xff]   ;;  %v736_v45 = vld [vmem:[%s985_s5 + $0x50] sm:$0xff]  }
   0xf   :  { %652 = vmatprep.subr.bf16.mxu0 %v732_v41  ;;  %v735_v44 = vld [vmem:[%s985_s5 + $0x8] sm:$0xff]   ;;  %v737_v46 = vld [vmem:[%s985_s5 + $0x10] sm:$0xff]   ;;  %v738_v47 = vld [vmem:[%s985_s5 + $0x58] sm:$0xff]  }
  0x10   :  { %653 = vmatpush3.bf16.msra.mxu0 %v733_v42  ;;  %v739_v48 = vld [vmem:[%s985_s5 + $0x18] sm:$0xff]   ;;  %v740_v49 = vld [vmem:[%s985_s5 + $0x60] sm:$0xff]   ;;  %v742_v51 = vld [vmem:[%s985_s5 + $0x68] sm:$0xff]  }
  0x11   :  { %340 = vmatpush1.bf16.msra.mxu1 %v695_v16  ;;  %654 = vmatprep.subr.bf16.mxu0 %v734_v43  ;;  %v741_v50 = vld [vmem:[%s985_s5 + $0x20] sm:$0xff]  }
  0x12   :  { %341 = vmatprep.subr.bf16.mxu1 %v696_v17  ;;  %v35_v55 = vld [vmem:[%s986_s2] sm:$0x3] }
  0x13   :  { %v40_v57 = vrot.slane %v35_v55, %v39_v54  ;;  %v44_v58 = vrot.slane %v35_v55, %v43_v56 }
  0x14   :  { %655 = vmatpush3.bf16.msra.mxu0 %v735_v44 }
  0x15   :  { %342 = vmatpush1.bf16.msra.mxu1 %v698_v18  ;;  %656 = vmatprep.subr.bf16.mxu0 %v736_v45 }
  0x16   :  { %343 = vmatprep.subr.bf16.mxu1 %v699_v19 }
  0x18   :  { %657 = vmatpush3.bf16.msra.mxu0 %v737_v46 }
  0x19   :  { %344 = vmatpush1.bf16.msra.mxu1 %v701_v20  ;;  %658 = vmatprep.subr.bf16.mxu0 %v738_v47 }
  0x1a   :  { %345 = vmatprep.subr.bf16.mxu1 %v702_v21 }
  0x1c   :  { %659 = vmatpush3.bf16.msra.mxu0 %v739_v48 }
  0x1d   :  { %346 = vmatpush1.bf16.msra.mxu1 %v704_v22  ;;  %660 = vmatprep.subr.bf16.mxu0 %v740_v49 }
  0x1e   :  { %347 = vmatprep.subr.bf16.mxu1 %v705_v23  ;;  %v743_v23 = vld [vmem:[%s985_s5 + $0x28] sm:$0xff]  }
  0x20   :  { %661 = vmatpush3.bf16.msra.mxu0 %v741_v50 }
  0x21   :  { %348 = vmatpush1.bf16.msra.mxu1 %v707_v24  ;;  %662 = vmatprep.subr.bf16.mxu0 %v742_v51  ;;  %v744_v24 = vld [vmem:[%s985_s5 + $0x70] sm:$0xff]  }
  0x22   :  { %349 = vmatprep.subr.bf16.mxu1 %v708_v25  ;;  %v745_v25 = vld [vmem:[%s985_s5 + $0x30] sm:$0xff]  }
  0x24   :  { %663 = vmatpush3.bf16.msra.mxu0 %v743_v23 }
  0x25   :  { %350 = vmatpush1.bf16.msra.mxu1 %v710_v26  ;;  %664 = vmatprep.subr.bf16.mxu0 %v744_v24  ;;  %v746_v26 = vld [vmem:[%s985_s5 + $0x78] sm:$0xff]  }
  0x26   :  { %351 = vmatprep.subr.bf16.mxu1 %v711_v27  ;;  %v747_v27 = vld [vmem:[%s985_s5 + $0x38] sm:$0xff]  }
  0x28   :  { %665 = vmatpush3.bf16.msra.mxu0 %v745_v25 }
  0x29   :  { %352 = vmatpush1.bf16.msra.mxu1 %v713_v28  ;;  %666 = vmatprep.subr.bf16.mxu0 %v746_v26  ;;  %v161_v28 = vld [vmem:[%s987_s4] sm:$0x3] }
  0x2a   :  { %353 = vmatprep.subr.bf16.mxu1 %v714_v29  ;;  %v166_v29 = vrot.slane %v161_v28, %v39_v54 }
  0x2c   :  { %667 = vmatpush3.bf16.msra.mxu0 %v747_v27 }
  0x2d   :  { %354 = vmatpush1.bf16.msra.mxu1 %v716_v30  ;;  %v170_v30 = vrot.slane %v161_v28, %v43_v56 }
  0x2e   :  { %355 = vmatprep.subr.bf16.mxu1 %v717_v31 }
  0x31   :  { %356 = vmatpush1.bf16.msra.mxu1 %v719_v32 }
  0x32   :  { %357 = vmatprep.subr.bf16.mxu1 %v720_v33 }
  0x35   :  { %358 = vmatpush1.bf16.msra.mxu1 %v722_v34 }
  0x36   :  { %359 = vmatprep.subr.bf16.mxu1 %v723_v35 }
  0x39   :  { %360 = vmatpush1.bf16.msra.mxu1 %v725_v36 }
  0x3a   :  { %361 = vmatprep.subr.bf16.mxu1 %v726_v37 }
  0x3d   :  { %362 = vmatpush1.bf16.msra.mxu1 %v728_v38 }
  0x3e   :  { %363 = vmatprep.subr.bf16.mxu1 %v729_v39 }
  0x41   :  { %364 = vmatpush1.bf16.msra.mxu1 %v731_v40 }
  0xd9   :  { %v98_v59 = vpop.f32.mrb[0].mxu0 }
  0xda   :  { %v99_v60 = vadd.f32 %v98_v59, %v40_v57  ;;  %v100_v61 = vpop.f32.mrb[1].mxu0 }
  0xdb   :  { %v101_v62 = vadd.f32 %v100_v61, %v44_v58  ;;  %v102_v63 = vpop.f32.mrb[2].mxu0 }
  0xdc   :  { %v103_v0 = vadd.f32 %v102_v63, %v40_v57  ;;  %v104_v1 = vpop.f32.mrb[3].mxu0  ;;  %v117_v3 = vmax.f32 %v99_v60, 0.0  ;;  %v635_v60 = vld [vmem:[%s988_s6] ss:$0 sm:$0xff] }
  0xdd   :  { %v105_v2 = vadd.f32 %v104_v1, %v44_v58  ;;  %v118_v5 = vmax.f32 %v101_v62, 0.0 }
  0xde   :  { %v119_v4 = vmax.f32 %v103_v0, 0.0 }
  0xdf   :  { %v120_v6 = vmax.f32 %v105_v2, 0.0 }
  0xe0   :  { %v125_v7 = vpack.c.bf16 %v119_v4, %v117_v3 }
  0xe1   :  { %v108_v8 = vpop.f32.mrb[4].mxu0  ;;  %v126_v9 = vpack.c.bf16 %v120_v6, %v118_v5 }
  0xe2   :  { %v109_v10 = vadd.f32 %v108_v8, %v40_v57  ;;  %v110_v11 = vpop.f32.mrb[5].mxu0 }
  0xe3   :  { %v111_v12 = vadd.f32 %v110_v11, %v44_v58  ;;  %v112_v13 = vpop.f32.mrb[6].mxu0  ;;  %365 = vmatprep.mubr.bf16.mxu1 %v126_v9 }
  0xe4   :  { %v113_v14 = vadd.f32 %v112_v13, %v40_v57  ;;  %v114_v15 = vpop.f32.mrb[7].mxu0  ;;  %366 = vmatmul.mubr.bf16.vlgmr.msra.gmra.mrb[0].mxu1 %v125_v7  ;;  %v121_v17 = vmax.f32 %v109_v10, 0.0 }
  0xe5   :  { %v115_v16 = vadd.f32 %v114_v15, %v44_v58  ;;  %v122_v19 = vmax.f32 %v111_v12, 0.0 }
  0xe6   :  { %v123_v18 = vmax.f32 %v113_v14, 0.0 }
  0xe7   :  { %v124_v20 = vmax.f32 %v115_v16, 0.0 }
  0xe8   :  { %v127_v21 = vpack.c.bf16 %v123_v18, %v121_v17 }
  0xe9   :  { %v128_v22 = vpack.c.bf16 %v124_v20, %v122_v19 }
  0xeb   :  { %375 = vmatprep.mubr.bf16.mxu1 %v128_v22 }
  0xec   :  { %376 = vmatmul.mubr.bf16.gmra.mrb[4].mxu1 %v127_v21 }
 0x1b7   :  { %v367_v31 = vpop.f32.mrb[0].mxu1 }
 0x1b8   :  { %v368_v32 = vadd.f32 %v367_v31, %v166_v29  ;;  %v369_v33 = vpop.f32.mrb[1].mxu1 }
 0x1b9   :  { %v370_v34 = vadd.f32 %v369_v33, %v170_v30  ;;  %v371_v35 = vpop.f32.mrb[2].mxu1 }
 0x1ba   :  { %v372_v36 = vadd.f32 %v371_v35, %v166_v29  ;;  %v373_v37 = vpop.f32.mrb[3].mxu1  ;;  %v386_v39 = vmax.f32 %v368_v32, 0.0 }
 0x1bb   :  { %v374_v38 = vadd.f32 %v373_v37, %v170_v30  ;;  %v387_v41 = vmax.f32 %v370_v34, 0.0 }
 0x1bc   :  { %v388_v40 = vmax.f32 %v372_v36, 0.0 }
 0x1bd   :  { %v389_v42 = vmax.f32 %v374_v38, 0.0 }
 0x1be   :  { %v394_v43 = vpack.c.bf16 %v388_v40, %v386_v39 }
 0x1bf   :  { %v395_v44 = vpack.c.bf16 %v389_v42, %v387_v41  ;;  %v377_v45 = vpop.f32.mrb[4].mxu1 }
 0x1c0   :  { %v378_v46 = vadd.f32 %v377_v45, %v166_v29  ;;  %v379_v47 = vpop.f32.mrb[5].mxu1 }
 0x1c1   :  { %v380_v48 = vadd.f32 %v379_v47, %v170_v30  ;;  %v381_v49 = vpop.f32.mrb[6].mxu1  ;;  %565 = vmatprep.mubr.bf16.mxu0 %v395_v44 }
 0x1c2   :  { %v382_v50 = vadd.f32 %v381_v49, %v166_v29  ;;  %v383_v51 = vpop.f32.mrb[7].mxu1  ;;  %566 = vmatmul.mubr.bf16.vlgmr.msra.gmra.mrb[8].mxu0 %v394_v43  ;;  %v390_v53 = vmax.f32 %v378_v46, 0.0 }
 0x1c3   :  { %v384_v52 = vadd.f32 %v383_v51, %v170_v30  ;;  %v391_v55 = vmax.f32 %v380_v48, 0.0 }
 0x1c4   :  { %v392_v54 = vmax.f32 %v382_v50, 0.0 }
 0x1c5   :  { %v393_v56 = vmax.f32 %v384_v52, 0.0 }
 0x1c6   :  { %v396_v57 = vpack.c.bf16 %v392_v54, %v390_v53 }
 0x1c7   :  { %v397_v58 = vpack.c.bf16 %v393_v56, %v391_v55 }
 0x1c9   :  { %573 = vmatprep.mubr.bf16.mxu0 %v397_v58 }
 0x1ca   :  { %574 = vmatmul.mubr.bf16.gmra.mrb[12].mxu0 %v396_v57 }
 0x295   :  { %v668_v59 = vpop.f32.mrb[8].mxu0 }
 0x296   :  { %v669_v61 = vpop.f32.mrb[9].mxu0 }
 0x297   :  { %v670_v62 = vadd.f32 %v669_v61, %v668_v59  ;;  %v671_v63 = vpop.f32.mrb[10].mxu0 }
 0x298   :  { %v672_v0 = vpop.f32.mrb[11].mxu0 }
 0x299   :  { %v568_v1 = vadd.f32 %v670_v62, %v635_v60  ;;  %v673_v2 = vadd.f32 %v672_v0, %v671_v63 }
 0x29b   :  { %748 = vtanh.f32 %v568_v1  ;;  %v571_v3 = vadd.f32 %v673_v2, %v635_v60 }
 0x29d   :  { %750 = vtanh.f32 %v571_v3  ;;  %v674_v4 = vpop.f32.mrb[12].mxu0 }
 0x29e   :  { %v675_v5 = vpop.f32.mrb[13].mxu0 }
 0x29f   :  { %v676_v6 = vadd.f32 %v675_v5, %v674_v4  ;;  %v677_v7 = vpop.f32.mrb[14].mxu0 }
 0x2a0   :  { %v678_v8 = vpop.f32.mrb[15].mxu0 }
 0x2a1   :  { %v576_v9 = vadd.f32 %v676_v6, %v635_v60  ;;  %v679_v10 = vadd.f32 %v678_v8, %v677_v7 }
 0x2a3   :  { %752 = vtanh.f32 %v576_v9  ;;  %v579_v11 = vadd.f32 %v679_v10, %v635_v60 }
 0x2a5   :  { %v749_v12 = vpop.eup %748  ;;  %754 = vtanh.f32 %v579_v11 }
 0x2a6   :  { %v586_v13 = vmul.f32 2.0, %v749_v12 }
 0x2a7   :  { %v751_v14 = vpop.eup %750 }
 0x2a8   :  { %591 = vst.msk [vmem:[%s989_s7] sm:$0xff] %vm590_vm1, %v586_v13  ;;  %v587_v15 = vmul.f32 2.0, %v751_v14 }
 0x2aa   :  { %592 = vst.msk [vmem:[%s989_s7 + $0x8] sm:$0xff] %vm590_vm1, %v587_v15 }
 0x2ad   :  { %v753_v16 = vpop.eup %752 }
 0x2ae   :  { %v588_v17 = vmul.f32 2.0, %v753_v16 }
 0x2af   :  { %v755_v18 = vpop.eup %754 }
 0x2b0   :  { %593 = vst.msk [vmem:[%s989_s7 + $0x10] sm:$0xff] %vm590_vm1, %v588_v17  ;;  %v589_v19 = vmul.f32 2.0, %v755_v18 }
 0x2b2   :  { %594 = vst.msk [vmem:[%s989_s7 + $0x18] sm:$0xff] %vm590_vm1, %v589_v19 }

</bundles_post_ra>
